<compile_context>
chip_gen: v5e
topology: v5e:2x2
jax: 0.10.0
libtpu: 0.0.40
codegen_flags: <defaults>
</compile_context>

<pallas_src>
import functools

import jax
import jax.numpy as jnp
from jax.experimental import pallas as pl
from jax.experimental.pallas import tpu as pltpu

LANE = 128


def graphsage_fused_kernel(a_ref, x_ref, w1s_ref, w1n_ref, b1_ref,
                           w2_ref, b2_ref, o_ref):
    """Fused 2-layer GraphSAGE ('mean') forward for the whole (small) graph.

    a_ref  : [N, N]           row-normalized adjacency, bf16
    x_ref  : [N, F_in]        node features, bf16
    w1s_ref: [F_in, H]        W1_self,  bf16
    w1n_ref: [F_in, H]        W1_neigh, bf16
    b1_ref : [1, H]           layer-1 bias, f32
    w2_ref : [2H, out_pad]    vstack(W2_self, W2_neigh), cols zero-padded to 128, bf16
    b2_ref : [1, out_pad]     layer-2 bias (lane-padded), f32
    o_ref  : [N, out_pad]     output (lane-padded), f32
    """
    a = a_ref[...]                                    # [N, N]     bf16
    x = x_ref[...]                                    # [N, F_in]  bf16

    # ---- layer 1: h1 = ReLU(x @ W1_self + (A @ x) @ W1_neigh + b1) ----
    # Aggregate-first: A-matmul output is only F_in wide (32) instead of H (128).
    agg_x = jnp.dot(a, x, preferred_element_type=jnp.float32).astype(jnp.bfloat16)
    h1 = jnp.dot(x, w1s_ref[...], preferred_element_type=jnp.float32)
    h1 = h1 + jnp.dot(agg_x, w1n_ref[...], preferred_element_type=jnp.float32)
    h1 = jnp.maximum(h1 + b1_ref[...], 0.0)           # [N, H] f32

    # ---- layer 2: out = h1 @ W2_self + (A @ h1) @ W2_neigh + b2 ----
    # Aggregate-first + concat-along-K (both halves 128-lane aligned) -> one
    # K=2H matmul against the row-stacked weight.
    h1_bf = h1.astype(jnp.bfloat16)
    agg_h = jnp.dot(a, h1_bf, preferred_element_type=jnp.float32).astype(jnp.bfloat16)
    cat = jnp.concatenate([h1_bf, agg_h], axis=-1)    # [N, 2H] bf16, lane-aligned
    o_ref[...] = (jnp.dot(cat, w2_ref[...], preferred_element_type=jnp.float32)
                  + b2_ref[...])                      # lane-dense [N, out_pad] store


def pack_graphsage_params(params):
    """One-time packing of weights/biases into kernel-ready layouts (not per-call)."""
    hidden = params["w1_self"].shape[1]
    f_out = params["w2_self"].shape[1]
    assert hidden % LANE == 0, "hidden dim must be a multiple of 128 (lane-aligned)"

    out_pad = ((f_out + LANE - 1) // LANE) * LANE
    w2_stack = jnp.concatenate([params["w2_self"], params["w2_neigh"]], axis=0)
    w2_stack = jnp.pad(w2_stack, ((0, 0), (0, out_pad - f_out)))        # [2H, out_pad]
    b2_pad = jnp.pad(params["b2"], ((0, 0), (0, out_pad - f_out)))      # [1, out_pad]

    return {
        "w1_self": params["w1_self"].astype(jnp.bfloat16),   # [F_in, H]
        "w1_neigh": params["w1_neigh"].astype(jnp.bfloat16),  # [F_in, H]
        "b1": params["b1"].astype(jnp.float32),               # [1, H]
        "w2_stack": w2_stack.astype(jnp.bfloat16),            # [2H, out_pad]
        "b2": b2_pad.astype(jnp.float32),                     # [1, out_pad]
    }


@functools.partial(jax.jit, static_argnames=("f_out",))
def graphsage_forward(a_bf, x_bf, packed, *, f_out):
    """h = ReLU(SAGE1(g, x)); h = SAGE2(g, h)  — fully fused in one pallas_call."""
    N = a_bf.shape[0]
    f_in = x_bf.shape[1]
    hidden = packed["w1_self"].shape[1]
    out_pad = packed["b2"].shape[1]

    out_padded = pl.pallas_call(
        graphsage_fused_kernel,
        out_shape=jax.ShapeDtypeStruct((N, out_pad), jnp.float32),
        grid=(1,),
        in_specs=[
            pl.BlockSpec((N, N), lambda i: (0, 0)),                 # adjacency
            pl.BlockSpec((N, f_in), lambda i: (0, 0)),              # features
            pl.BlockSpec((f_in, hidden), lambda i: (0, 0)),         # W1_self
            pl.BlockSpec((f_in, hidden), lambda i: (0, 0)),         # W1_neigh
            pl.BlockSpec((1, hidden), lambda i: (0, 0)),            # b1
            pl.BlockSpec((2 * hidden, out_pad), lambda i: (0, 0)),  # [W2_self; W2_neigh]
            pl.BlockSpec((1, out_pad), lambda i: (0, 0)),           # b2 (padded)
        ],
        out_specs=pl.BlockSpec((N, out_pad), lambda i: (0, 0)),
        compiler_params=pltpu.CompilerParams(
            dimension_semantics=("arbitrary",)),
    )(a_bf, x_bf, packed["w1_self"], packed["w1_neigh"], packed["b1"],
      packed["w2_stack"], packed["b2"])

    return out_padded[:, :f_out]


def graphsage_reference_bf16(a_norm, x, params):
    """Pure-JAX reference mirroring the kernel's bf16-operand / f32-accum math
    and its aggregate-first operation order."""
    a = a_norm.astype(jnp.bfloat16)
    xb = x.astype(jnp.bfloat16)
    w1s = params["w1_self"].astype(jnp.bfloat16)
    w1n = params["w1_neigh"].astype(jnp.bfloat16)
    w2s = params["w2_self"].astype(jnp.bfloat16)
    w2n = params["w2_neigh"].astype(jnp.bfloat16)

    agg_x = jnp.dot(a, xb, preferred_element_type=jnp.float32).astype(jnp.bfloat16)
    h1 = (jnp.dot(xb, w1s, preferred_element_type=jnp.float32)
          + jnp.dot(agg_x, w1n, preferred_element_type=jnp.float32)
          + params["b1"])
    h1 = jnp.maximum(h1, 0.0)

    h1b = h1.astype(jnp.bfloat16)
    agg_h = jnp.dot(a, h1b, preferred_element_type=jnp.float32).astype(jnp.bfloat16)
    return (jnp.dot(h1b, w2s, preferred_element_type=jnp.float32)
            + jnp.dot(agg_h, w2n, preferred_element_type=jnp.float32)
            + params["b2"])


def graphsage_reference_f32(a_norm, x, params):
    """Full-precision reference of the DGL SAGEConv('mean') semantics."""
    def layer(a, h, ws, wn, b):
        return h @ ws + (a @ h) @ wn + b
    h = jax.nn.relu(layer(a_norm, x, params["w1_self"], params["w1_neigh"],
                          params["b1"]))
    return layer(a_norm, h, params["w2_self"], params["w2_neigh"], params["b2"])


if __name__ == "__main__":
    # Small synthetic graph (stand-in for the Cora dataset the PyTorch code loads).
    N = 128          # number of nodes
    IN_FEATS = 32    # in_feats
    HIDDEN = 128     # SAGEConv(in_feats, 128)
    H_FEATS = 16     # h_feats

    key = jax.random.PRNGKey(0)
    k_adj, k_x, k1, k2, k3, k4, k5, k6 = jax.random.split(key, 8)

    # Deterministic random graph -> dense adjacency, row-normalized ('mean' agg).
    adj = jax.random.bernoulli(k_adj, p=0.08, shape=(N, N)).astype(jnp.float32)
    adj = adj * (1.0 - jnp.eye(N, dtype=jnp.float32))        # no self-loops
    deg = adj.sum(axis=1, keepdims=True)
    a_norm = jnp.where(deg > 0, adj / jnp.maximum(deg, 1.0), 0.0)

    # Node features.
    x = jax.random.normal(k_x, (N, IN_FEATS), dtype=jnp.float32)

    # Deterministic parameter init (fc_self / fc_neigh; single bias vector per layer).
    def init(k, shape, fan_in):
        return (jax.random.normal(k, shape, dtype=jnp.float32)
                / jnp.sqrt(jnp.float32(fan_in)))

    params = {
        "w1_self": init(k1, (IN_FEATS, HIDDEN), IN_FEATS),
        "w1_neigh": init(k2, (IN_FEATS, HIDDEN), IN_FEATS),
        "b1": 0.1 * jax.random.normal(k5, (1, HIDDEN), dtype=jnp.float32),
        "w2_self": init(k3, (HIDDEN, H_FEATS), HIDDEN),
        "w2_neigh": init(k4, (HIDDEN, H_FEATS), HIDDEN),
        "b2": 0.1 * jax.random.normal(k6, (1, H_FEATS), dtype=jnp.float32),
    }

    # One-time packing / casting (hoisted out of the per-call hot path).
    packed = pack_graphsage_params(params)
    a_bf = a_norm.astype(jnp.bfloat16)
    x_bf = x.astype(jnp.bfloat16)

    out = graphsage_forward(a_bf, x_bf, packed, f_out=H_FEATS)
    out = jax.block_until_ready(out)
    assert out.shape == (N, H_FEATS)

    # Exact-math check against a reference that mirrors the kernel's bf16 casts
    # and aggregate-first ordering.
    ref_bf = graphsage_reference_bf16(a_norm, x, params)
    assert jnp.allclose(out, ref_bf, atol=1e-2, rtol=1e-2)

    # Semantics check against the full-f32 DGL-style reference (bf16 tolerance).
    ref_f32 = graphsage_reference_f32(a_norm, x, params)
    assert jnp.allclose(out, ref_f32, atol=1e-1, rtol=5e-2)

    print("KERNEL_OK")
</pallas_src>

<mosaic_0001>
module attributes {stable_mosaic.version = 11 : i64} {
  func.func @graphsage_fused_kernel(%arg0: i32, %arg1: memref<128x128xbf16, #tpu.memory_space<vmem>>, %arg2: memref<128x32xbf16, #tpu.memory_space<vmem>>, %arg3: memref<32x128xbf16, #tpu.memory_space<vmem>>, %arg4: memref<32x128xbf16, #tpu.memory_space<vmem>>, %arg5: memref<1x128xf32, #tpu.memory_space<vmem>>, %arg6: memref<256x128xbf16, #tpu.memory_space<vmem>>, %arg7: memref<1x128xf32, #tpu.memory_space<vmem>>, %arg8: memref<128x128xf32, #tpu.memory_space<vmem>>) attributes {dimension_semantics = [#tpu.dimension_semantics<arbitrary>], iteration_bounds = array<i64: 1>, scalar_prefetch = 0 : i64, scratch_operands = 0 : i64, tpu.core_type = #tpu.core_type<tc>, window_params = [{pipeline_mode = #tpu.pipeline_mode<synchronous>, transform_indices = @transform_0, window_bounds = array<i64: 128, 128>}, {pipeline_mode = #tpu.pipeline_mode<synchronous>, transform_indices = @transform_1, window_bounds = array<i64: 128, 32>}, {pipeline_mode = #tpu.pipeline_mode<synchronous>, transform_indices = @transform_2, window_bounds = array<i64: 32, 128>}, {pipeline_mode = #tpu.pipeline_mode<synchronous>, transform_indices = @transform_3, window_bounds = array<i64: 32, 128>}, {pipeline_mode = #tpu.pipeline_mode<synchronous>, transform_indices = @transform_4, window_bounds = array<i64: 1, 128>}, {pipeline_mode = #tpu.pipeline_mode<synchronous>, transform_indices = @transform_5, window_bounds = array<i64: 256, 128>}, {pipeline_mode = #tpu.pipeline_mode<synchronous>, transform_indices = @transform_6, window_bounds = array<i64: 1, 128>}, {pipeline_mode = #tpu.pipeline_mode<synchronous>, transform_indices = @transform_7, window_bounds = array<i64: 128, 128>}]} {
    %c0 = arith.constant 0 : index
    %c0_0 = arith.constant 0 : index
    %0 = vector.load %arg1[%c0, %c0_0] : memref<128x128xbf16, #tpu.memory_space<vmem>>, vector<128x128xbf16>
    %c0_1 = arith.constant 0 : index
    %c0_2 = arith.constant 0 : index
    %1 = vector.load %arg2[%c0_1, %c0_2] : memref<128x32xbf16, #tpu.memory_space<vmem>>, vector<128x32xbf16>
    %cst = arith.constant dense<0.000000e+00> : vector<128x32xf32>
    %2 = tpu.matmul %0, %1, %cst {dimension_numbers = #tpu.dot_dimension_numbers<[1], [0], [0], [1], [0, 0, 1, 1], [], []>} : vector<128x128xbf16>, vector<128x32xbf16>, vector<128x32xf32> -> vector<128x32xf32>
    %3 = arith.truncf %2 : vector<128x32xf32> to vector<128x32xbf16>
    %c0_3 = arith.constant 0 : index
    %c0_4 = arith.constant 0 : index
    %4 = vector.load %arg3[%c0_3, %c0_4] : memref<32x128xbf16, #tpu.memory_space<vmem>>, vector<32x128xbf16>
    %cst_5 = arith.constant dense<0.000000e+00> : vector<128x128xf32>
    %5 = tpu.matmul %1, %4, %cst_5 {dimension_numbers = #tpu.dot_dimension_numbers<[1], [0], [0], [1], [0, 0, 1, 1], [], []>} : vector<128x32xbf16>, vector<32x128xbf16>, vector<128x128xf32> -> vector<128x128xf32>
    %c0_6 = arith.constant 0 : index
    %c0_7 = arith.constant 0 : index
    %6 = vector.load %arg4[%c0_6, %c0_7] : memref<32x128xbf16, #tpu.memory_space<vmem>>, vector<32x128xbf16>
    %cst_8 = arith.constant dense<0.000000e+00> : vector<128x128xf32>
    %7 = tpu.matmul %3, %6, %cst_8 {dimension_numbers = #tpu.dot_dimension_numbers<[1], [0], [0], [1], [0, 0, 1, 1], [], []>} : vector<128x32xbf16>, vector<32x128xbf16>, vector<128x128xf32> -> vector<128x128xf32>
    %8 = arith.addf %5, %7 : vector<128x128xf32>
    %c0_9 = arith.constant 0 : index
    %c0_10 = arith.constant 0 : index
    %9 = vector.load %arg5[%c0_9, %c0_10] : memref<1x128xf32, #tpu.memory_space<vmem>>, vector<1x128xf32>
    %10 = vector.broadcast %9 : vector<1x128xf32> to vector<128x128xf32>
    %11 = arith.addf %8, %10 : vector<128x128xf32>
    %cst_11 = arith.constant 0.000000e+00 : f32
    %12 = vector.broadcast %cst_11 : f32 to vector<128x128xf32>
    %13 = arith.maximumf %11, %12 : vector<128x128xf32>
    %14 = arith.truncf %13 : vector<128x128xf32> to vector<128x128xbf16>
    %cst_12 = arith.constant dense<0.000000e+00> : vector<128x128xf32>
    %15 = tpu.matmul %0, %14, %cst_12 {dimension_numbers = #tpu.dot_dimension_numbers<[1], [0], [0], [1], [0, 0, 1, 1], [], []>} : vector<128x128xbf16>, vector<128x128xbf16>, vector<128x128xf32> -> vector<128x128xf32>
    %16 = arith.truncf %15 : vector<128x128xf32> to vector<128x128xbf16>
    %17 = tpu.concatenate %14, %16 in 1 : vector<128x128xbf16>, vector<128x128xbf16> -> vector<128x256xbf16>
    %c0_13 = arith.constant 0 : index
    %c0_14 = arith.constant 0 : index
    %18 = vector.load %arg6[%c0_13, %c0_14] : memref<256x128xbf16, #tpu.memory_space<vmem>>, vector<256x128xbf16>
    %cst_15 = arith.constant dense<0.000000e+00> : vector<128x128xf32>
    %19 = tpu.matmul %17, %18, %cst_15 {dimension_numbers = #tpu.dot_dimension_numbers<[1], [0], [0], [1], [0, 0, 1, 1], [], []>} : vector<128x256xbf16>, vector<256x128xbf16>, vector<128x128xf32> -> vector<128x128xf32>
    %c0_16 = arith.constant 0 : index
    %c0_17 = arith.constant 0 : index
    %20 = vector.load %arg7[%c0_16, %c0_17] : memref<1x128xf32, #tpu.memory_space<vmem>>, vector<1x128xf32>
    %21 = vector.broadcast %20 : vector<1x128xf32> to vector<128x128xf32>
    %22 = arith.addf %19, %21 : vector<128x128xf32>
    %c0_18 = arith.constant 0 : index
    %c0_19 = arith.constant 0 : index
    %23 = vector.load %arg8[%c0_18, %c0_19] : memref<128x128xf32, #tpu.memory_space<vmem>>, vector<128x128xf32>
    tpu.vector_store %arg8[%c0_18, %c0_19], %22 {strides = array<i32>} : memref<128x128xf32, #tpu.memory_space<vmem>>, vector<128x128xf32>,
    return
  }
  func.func @transform_0(%arg0: i32) -> (i32, i32) {
    %c0_i32 = arith.constant 0 : i32
    %c0_i32_0 = arith.constant 0 : i32
    %c0_i32_1 = arith.constant 0 : i32
    return %c0_i32, %c0_i32_0 : i32, i32
  }
  func.func @transform_1(%arg0: i32) -> (i32, i32) {
    %c0_i32 = arith.constant 0 : i32
    %c0_i32_0 = arith.constant 0 : i32
    %c0_i32_1 = arith.constant 0 : i32
    return %c0_i32, %c0_i32_0 : i32, i32
  }
  func.func @transform_2(%arg0: i32) -> (i32, i32) {
    %c0_i32 = arith.constant 0 : i32
    %c0_i32_0 = arith.constant 0 : i32
    %c0_i32_1 = arith.constant 0 : i32
    return %c0_i32, %c0_i32_0 : i32, i32
  }
  func.func @transform_3(%arg0: i32) -> (i32, i32) {
    %c0_i32 = arith.constant 0 : i32
    %c0_i32_0 = arith.constant 0 : i32
    %c0_i32_1 = arith.constant 0 : i32
    return %c0_i32, %c0_i32_0 : i32, i32
  }
  func.func @transform_4(%arg0: i32) -> (i32, i32) {
    %c0_i32 = arith.constant 0 : i32
    %c0_i32_0 = arith.constant 0 : i32
    %c0_i32_1 = arith.constant 0 : i32
    return %c0_i32, %c0_i32_0 : i32, i32
  }
  func.func @transform_5(%arg0: i32) -> (i32, i32) {
    %c0_i32 = arith.constant 0 : i32
    %c0_i32_0 = arith.constant 0 : i32
    %c0_i32_1 = arith.constant 0 : i32
    return %c0_i32, %c0_i32_0 : i32, i32
  }
  func.func @transform_6(%arg0: i32) -> (i32, i32) {
    %c0_i32 = arith.constant 0 : i32
    %c0_i32_0 = arith.constant 0 : i32
    %c0_i32_1 = arith.constant 0 : i32
    return %c0_i32, %c0_i32_0 : i32, i32
  }
  func.func @transform_7(%arg0: i32) -> (i32, i32) {
    %c0_i32 = arith.constant 0 : i32
    %c0_i32_0 = arith.constant 0 : i32
    %c0_i32_1 = arith.constant 0 : i32
    return %c0_i32, %c0_i32_0 : i32, i32
  }
}

</mosaic_0001>

<bundles_post_ra>
// kernel: graphsage_forward.1
= control target key start
LH: loop header
LB: loop body
LE: loop exit
PB: predicated region body
PF: predicated region fallthrough
CT: control target
= control target key end

     0   :  { %12 = vsyncpa [#allocation3], 0  ;;  %s1404_s0 = inlined_call_operand.vmem [shape: bf16[128,128], index: 0, kind: input, shape index: {}]   ;;  %s1405_s1 = inlined_call_operand.vmem [shape: bf16[128,32], index: 1, kind: input, shape index: {}]   ;;  %s1406_s2 = inlined_call_operand.vmem [shape: bf16[32,128], index: 2, kind: input, shape index: {}]   ;;  %s1407_s3 = inlined_call_operand.hbm [shape: bf16[32,128], index: 3, kind: input, shape index: {}]   ;;  %s1408_s4 = inlined_call_operand.vmem [shape: f32[1,128], index: 4, kind: input, shape index: {}]   ;;  %s1409_s5 = inlined_call_operand.hbm [shape: bf16[256,128], index: 5, kind: input, shape index: {}]   ;;  %s1410_s6 = inlined_call_operand.vmem [shape: f32[1,128], index: 6, kind: input, shape index: {}]   ;;  %s1411_s7 = inlined_call_operand.vmem [shape: f32[128,128], index: 7, kind: output, shape index: {}]  }
   0x1   :  { %s24_s26 = sshll.u32 %s1407_s3, 4  ;;  %s25_s26 = int_to_ptr.hbm [resolvable:$true] %s24_s26 }
   0x2   :  { %13 = vsyncpa [#allocation5], 0  ;;  %s1146_s27 = smov [#allocation2]   ;;  %s39_s8 = sshll.u32 %s1409_s5, 4  ;;  %s40_s8 = int_to_ptr.hbm [resolvable:$true] %s39_s8 }
   0x3   :  { %s26_s28 = sshll.u32 %s1146_s27, 4  ;;  %s1147_s9 = smov 64   ;;  %s27_s28 = int_to_ptr.vmem [resolvable:$true] %s26_s28 }
   0x4   :  { %s1148_s10 = smov 4   ;;  %s1149_s11 = smov [#allocation4]  }
   0x5   :  { %32 = dma.hbm_to_vmem [thread:$0]  %s25_s26, 256, %s27_s28, [#allocation3], %s1147_s9, %s1147_s9, %s1148_s10  }
   0x6   :  { %s41_s12 = sshll.u32 %s1149_s11, 4  ;;  %s42_s12 = int_to_ptr.vmem [resolvable:$true] %s41_s12 }
   0x7   :  { %47 = dma.hbm_to_vmem [thread:$0]  %s40_s8, 2048, %s42_s12, [#allocation5], %s1147_s9, %s1147_s9, %s1148_s10  }
   0x8   :  { %1142 = dma.done.wait [#allocation3], 256  }
   0x9   :  { %1143 = vsyncadd [#allocation3], 4294967040 }
   0xa   :  { %1144 = dma.done.wait [#allocation5], 2048  }
   0xb   :  { %1145 = vsyncadd [#allocation5], 4294965248  ;;  %v1063_v0 = vld [vmem:[%s1405_s1 + $0x38] sm:$0xff]  ;;  %v1062_v1 = vld [vmem:[%s1405_s1 + $0x30] sm:$0xff]  ;;  %vm264_vm0 = vcmask 261120  }
   0xc   :  { %187 = vmatpush.bf16.msra.mxu0 %v1063_v0  ;;  %v1061_v2 = vld [vmem:[%s1405_s1 + $0x28] sm:$0xff]  ;;  %v1060_v3 = vld [vmem:[%s1405_s1 + $0x20] sm:$0xff]  ;;  %v1059_v4 = vld [vmem:[%s1405_s1 + $0x18] sm:$0xff] }
   0xd   :  { %v1058_v5 = vld [vmem:[%s1405_s1 + $0x10] sm:$0xff]  ;;  %v1057_v6 = vld [vmem:[%s1405_s1 + $0x8] sm:$0xff]  ;;  %v1056_v7 = vld [vmem:[%s1405_s1] sm:$0xff] }
   0xe   :  { %v1223_v8 = vld [vmem:[%s1404_s0] sm:$0xff]  ;;  %v1229_v9 = vld [vmem:[%s1404_s0 + $0x8] sm:$0xff]  ;;  %v1235_v10 = vld [vmem:[%s1404_s0 + $0x10] sm:$0xff] }
   0xf   :  { %v1241_v11 = vld [vmem:[%s1404_s0 + $0x18] sm:$0xff]  ;;  %v1247_v12 = vld [vmem:[%s1404_s0 + $0x20] sm:$0xff]  ;;  %v1253_v13 = vld [vmem:[%s1404_s0 + $0x28] sm:$0xff] }
  0x10   :  { %188 = vmatpush.bf16.msra.mxu0 %v1062_v1  ;;  %v1065_v14 = vld [vmem:[%s1406_s2 + $0x8] sm:$0xff]  ;;  %v1262_v15 = vld [vmem:[%s1404_s0 + $0x30] sm:$0xff]  ;;  %v1064_v17 = vld [vmem:[%s1406_s2] sm:$0xff] }
  0x11   :  { %380 = vmatpush.bf16.msra.mxu2 %v1065_v14  ;;  %1086 = vmatpush.bf16.msra.mxu3 %v1065_v14  ;;  %v1067_v16 = vld [vmem:[#allocation2 + $0x8] sm:$0xff]  ;;  %v1066_v18 = vld [vmem:[#allocation2] sm:$0xff]  ;;  %v1273_v19 = vld [vmem:[%s1404_s0 + $0x38] sm:$0xff] }
  0x12   :  { %1084 = vmatpush.bf16.msra.mxu1 %v1067_v16  ;;  %v1075_v38 = vld [vmem:[#allocation4 + $0x38] sm:$0xff]  ;;  %v1074_v39 = vld [vmem:[#allocation4 + $0x30] sm:$0xff]  ;;  %v1073_v41 = vld [vmem:[#allocation4 + $0x28] sm:$0xff] }
  0x13   :  { %v1072_v43 = vld [vmem:[#allocation4 + $0x20] sm:$0xff]  ;;  %v1071_v45 = vld [vmem:[#allocation4 + $0x18] sm:$0xff]  ;;  %v1070_v47 = vld [vmem:[#allocation4 + $0x10] sm:$0xff] }
  0x14   :  { %189 = vmatpush.bf16.msra.mxu0 %v1061_v2  ;;  %v1069_v49 = vld [vmem:[#allocation4 + $0x8] sm:$0xff]  ;;  %v1068_v51 = vld [vmem:[#allocation4] sm:$0xff]  ;;  %v1293_v57 = vld [vmem:[%s1408_s4] ss:$0 sm:$0xff] }
  0x15   :  { %381 = vmatpush.bf16.msra.mxu2 %v1064_v17  ;;  %1087 = vmatpush.bf16.msra.mxu3 %v1064_v17 }
  0x16   :  { %1085 = vmatpush.bf16.msra.mxu1 %v1066_v18 }
  0x18   :  { %190 = vmatpush.bf16.msra.mxu0 %v1060_v3  ;;  %976 = vmatmul.msk.bf16.vlgmr.msra.gmra.mxu2 %vm264_vm0, %v1056_v7 }
  0x19   :  { %981 = vmatmul.msk.bf16.vlgmr.msra.gmra.mxu3 %vm264_vm0, %v1061_v2 }
  0x1a   :  { %768 = vmatpush.bf16.msrb.mxu1 %v1075_v38 }
  0x1c   :  { %191 = vmatpush.bf16.msra.mxu0 %v1059_v4 }
  0x1e   :  { %769 = vmatpush.bf16.msrb.mxu1 %v1074_v39 }
  0x20   :  { %192 = vmatpush.bf16.msra.mxu0 %v1058_v5 }
  0x22   :  { %770 = vmatpush.bf16.msrb.mxu1 %v1073_v41 }
  0x24   :  { %193 = vmatpush.bf16.msra.mxu0 %v1057_v6 }
  0x26   :  { %771 = vmatpush.bf16.msrb.mxu1 %v1072_v43 }
  0x28   :  { %194 = vmatpush.bf16.msra.mxu0 %v1056_v7  ;;  %977 = vmatmul.msk.bf16.gmra.mxu2 %vm264_vm0, %v1057_v6 }
  0x29   :  { %982 = vmatmul.msk.bf16.gmra.mxu3 %vm264_vm0, %v1062_v1 }
  0x2a   :  { %772 = vmatpush.bf16.msrb.mxu1 %v1071_v45 }
  0x2b   :  { %195 = vmatmul.bf16.vlgmr.msra.gmra.mxu0 %v1223_v8 }
  0x2c   :  { %295 = vmatpush.bf16.msrb.mxu0 %v1067_v16 }
  0x2e   :  { %773 = vmatpush.bf16.msrb.mxu1 %v1070_v47 }
  0x30   :  { %296 = vmatpush.bf16.msrb.mxu0 %v1066_v18 }
  0x32   :  { %774 = vmatpush.bf16.msrb.mxu1 %v1069_v49 }
  0x36   :  { %775 = vmatpush.bf16.msrb.mxu1 %v1068_v51 }
  0x38   :  { %978 = vmatmul.msk.bf16.gmra.mxu2 %vm264_vm0, %v1058_v5 }
  0x39   :  { %983 = vmatmul.msk.bf16.gmra.mxu3 %vm264_vm0, %v1063_v0 }
  0x3b   :  { %200 = vmatmul.bf16.gmra.mxu0 %v1229_v9 }
  0x48   :  { %979 = vmatmul.msk.bf16.gmra.mxu2 %vm264_vm0, %v1059_v4 }
  0x4b   :  { %205 = vmatmul.bf16.gmra.mxu0 %v1235_v10 }
  0x58   :  { %980 = vmatmul.msk.bf16.gmra.mxu2 %vm264_vm0, %v1060_v3 }
  0x5b   :  { %210 = vmatmul.bf16.gmra.mxu0 %v1241_v11 }
  0x6b   :  { %215 = vmatmul.bf16.gmra.mxu0 %v1247_v12 }
  0x7b   :  { %220 = vmatmul.bf16.gmra.mxu0 %v1253_v13 }
  0x8b   :  { %225 = vmatmul.bf16.gmra.mxu0 %v1262_v15 }
  0x9b   :  { %230 = vmatmul.bf16.gmra.mxu0 %v1273_v19  ;;  %v383_v48 = vpop.f32.mrf.mxu2 }
  0xa3   :  { %v385_v53 = vpop.f32.mrf.mxu2 }
  0xa8   :  { %v196_v20 = vpop.f32.mrf.mxu0 }
  0xab   :  { %v388_v55 = vpop.f32.mrf.mxu2 }
  0xb0   :  { %v198_v21 = vpop.f32.mrf.mxu0 }
  0xb1   :  { %v236_v22 = vpack.c.bf16 %v198_v21, %v196_v20 }
  0xb3   :  { %960 = vmatmul.msk.bf16.vlgmr.msrb.gmra.mxu0 %vm264_vm0, %v236_v22  ;;  %v390_v62 = vpop.f32.mrf.mxu2 }
  0xb8   :  { %v201_v23 = vpop.f32.mrf.mxu0 }
  0xbb   :  { %v393_v14 = vpop.f32.mrf.mxu2 }
  0xc0   :  { %v203_v24 = vpop.f32.mrf.mxu0 }
  0xc1   :  { %v237_v25 = vpack.c.bf16 %v203_v24, %v201_v23 }
  0xc3   :  { %961 = vmatmul.msk.bf16.gmra.mxu0 %vm264_vm0, %v237_v25  ;;  %v395_v24 = vpop.f32.mrf.mxu2 }
  0xc8   :  { %v206_v26 = vpop.f32.mrf.mxu0 }
  0xd0   :  { %v208_v27 = vpop.f32.mrf.mxu0 }
  0xd1   :  { %v238_v28 = vpack.c.bf16 %v208_v27, %v206_v26 }
  0xd3   :  { %962 = vmatmul.msk.bf16.gmra.mxu0 %vm264_vm0, %v238_v28 }
  0xd8   :  { %v211_v29 = vpop.f32.mrf.mxu0 }
  0xe0   :  { %v213_v30 = vpop.f32.mrf.mxu0 }
  0xe1   :  { %v239_v31 = vpack.c.bf16 %v213_v30, %v211_v29 }
  0xe3   :  { %963 = vmatmul.msk.bf16.vlgmr.msra.gmra.mxu1 %vm264_vm0, %v239_v31 }
  0xe8   :  { %v216_v32 = vpop.f32.mrf.mxu0 }
  0xf0   :  { %v218_v33 = vpop.f32.mrf.mxu0 }
  0xf1   :  { %v240_v34 = vpack.c.bf16 %v218_v33, %v216_v32  ;;  %v398_v33 = vpop.f32.mrf.mxu2 }
  0xf3   :  { %964 = vmatmul.msk.bf16.gmra.mxu1 %vm264_vm0, %v240_v34 }
  0xf8   :  { %v221_v35 = vpop.f32.mrf.mxu0 }
 0x100   :  { %v223_v36 = vpop.f32.mrf.mxu0 }
 0x101   :  { %v241_v37 = vpack.c.bf16 %v223_v36, %v221_v35 }
 0x103   :  { %965 = vmatmul.msk.bf16.gmra.mxu1 %vm264_vm0, %v241_v37 }
 0x108   :  { %v226_v40 = vpop.f32.mrf.mxu0 }
 0x110   :  { %v228_v42 = vpop.f32.mrf.mxu0 }
 0x111   :  { %v242_v44 = vpack.c.bf16 %v228_v42, %v226_v40 }
 0x113   :  { %966 = vmatmul.msk.bf16.gmra.mxu1 %vm264_vm0, %v242_v44  ;;  %v400_v44 = vpop.f32.mrf.mxu2 }
 0x118   :  { %v231_v46 = vpop.f32.mrf.mxu0 }
 0x11b   :  { %v403_v51 = vpop.f32.mrf.mxu2 }
 0x120   :  { %v233_v50 = vpop.f32.mrf.mxu0 }
 0x121   :  { %v243_v52 = vpack.c.bf16 %v233_v50, %v231_v46 }
 0x123   :  { %967 = vmatmul.msk.bf16.gmra.mxu1 %vm264_vm0, %v243_v52 }
 0x130   :  { %v298_v54 = vpop.f32.mrf.mxu0 }
 0x131   :  { %v384_v56 = vadd.f32 %v383_v48, %v298_v54 }
 0x133   :  { %v427_v58 = vadd.f32 %v1293_v57, %v384_v56 }
 0x135   :  { %v443_v60 = vmax.f32 %v427_v58, 0.0 }
 0x137   :  { %v459_v0 = vpack.c.bf16 %v443_v60, %v443_v60 }
 0x138   :  { %v300_v59 = vpop.f32.mrf.mxu0 }
 0x139   :  { %v386_v61 = vadd.f32 %v385_v53, %v300_v59  ;;  %v491_v4 = vunpack.c.l.b16 %v459_v0 }
 0x13b   :  { %v428_v63 = vadd.f32 %v1293_v57, %v386_v61 }
 0x13d   :  { %v444_v1 = vmax.f32 %v428_v63, 0.0  ;;  %v408_v63 = vpop.f32.mrf.mxu3 }
 0x13f   :  { %v460_v2 = vpack.c.bf16 %v444_v1, %v444_v1 }
 0x140   :  { %v303_v3 = vpop.f32.mrf.mxu0 }
 0x141   :  { %v492_v5 = vunpack.c.l.b16 %v460_v2  ;;  %v389_v6 = vadd.f32 %v388_v55, %v303_v3 }
 0x143   :  { %v1297_v7 = vpack.c.b16 %v492_v5, %v491_v4  ;;  %v429_v16 = vadd.f32 %v1293_v57, %v389_v6 }
 0x145   :  { %776 = vmatmul.bf16.vlgmr.msrb.gmra.mxu1 %v1297_v7  ;;  %v445_v18 = vmax.f32 %v429_v16, 0.0  ;;  %v410_v16 = vpop.f32.mrf.mxu3 }
 0x147   :  { %v461_v22 = vpack.c.bf16 %v445_v18, %v445_v18 }
 0x148   :  { %v305_v17 = vpop.f32.mrf.mxu0 }
 0x149   :  { %v391_v20 = vadd.f32 %v390_v62, %v305_v17  ;;  %v493_v28 = vunpack.c.l.b16 %v461_v22  ;;  %v405_v62 = vpop.f32.mrf.mxu2 }
 0x14b   :  { %v430_v21 = vadd.f32 %v1293_v57, %v391_v20 }
 0x14d   :  { %v446_v23 = vmax.f32 %v430_v21, 0.0 }
 0x14f   :  { %v462_v25 = vpack.c.bf16 %v446_v23, %v446_v23 }
 0x150   :  { %v308_v26 = vpop.f32.mrf.mxu0 }
 0x151   :  { %v394_v27 = vadd.f32 %v393_v14, %v308_v26  ;;  %v494_v29 = vunpack.c.l.b16 %v462_v25  ;;  %v413_v26 = vpop.f32.mrf.mxu3 }
 0x153   :  { %v1302_v30 = vpack.c.b16 %v494_v29, %v493_v28  ;;  %v431_v31 = vadd.f32 %v1293_v57, %v394_v27 }
 0x155   :  { %781 = vmatmul.bf16.gmra.mxu1 %v1302_v30  ;;  %v447_v34 = vmax.f32 %v431_v31, 0.0 }
 0x157   :  { %v463_v37 = vpack.c.bf16 %v447_v34, %v447_v34 }
 0x158   :  { %v310_v32 = vpop.f32.mrf.mxu0 }
 0x159   :  { %v396_v35 = vadd.f32 %v395_v24, %v310_v32  ;;  %v495_v42 = vunpack.c.l.b16 %v463_v37  ;;  %v415_v37 = vpop.f32.mrf.mxu3 }
 0x15b   :  { %v432_v36 = vadd.f32 %v1293_v57, %v396_v35 }
 0x15d   :  { %v448_v38 = vmax.f32 %v432_v36, 0.0 }
 0x15f   :  { %v464_v39 = vpack.c.bf16 %v448_v38, %v448_v38 }
 0x160   :  { %v313_v40 = vpop.f32.mrf.mxu1 }
 0x161   :  { %v399_v41 = vadd.f32 %v398_v33, %v313_v40  ;;  %v496_v43 = vunpack.c.l.b16 %v464_v39 }
 0x163   :  { %v1307_v45 = vpack.c.b16 %v496_v43, %v495_v42  ;;  %v433_v46 = vadd.f32 %v1293_v57, %v399_v41 }
 0x165   :  { %786 = vmatmul.bf16.gmra.mxu1 %v1307_v45  ;;  %v449_v48 = vmax.f32 %v433_v46, 0.0  ;;  %v418_v46 = vpop.f32.mrf.mxu3 }
 0x167   :  { %v465_v52 = vpack.c.bf16 %v449_v48, %v449_v48 }
 0x168   :  { %v315_v47 = vpop.f32.mrf.mxu1 }
 0x169   :  { %v401_v49 = vadd.f32 %v400_v44, %v315_v47  ;;  %v497_v58 = vunpack.c.l.b16 %v465_v52 }
 0x16b   :  { %v434_v50 = vadd.f32 %v1293_v57, %v401_v49 }
 0x16d   :  { %v450_v53 = vmax.f32 %v434_v50, 0.0 }
 0x16f   :  { %v466_v54 = vpack.c.bf16 %v450_v53, %v450_v53 }
 0x170   :  { %v318_v55 = vpop.f32.mrf.mxu1 }
 0x171   :  { %v404_v56 = vadd.f32 %v403_v51, %v318_v55  ;;  %v498_v59 = vunpack.c.l.b16 %v466_v54  ;;  %v420_v54 = vpop.f32.mrf.mxu3 }
 0x173   :  { %v1312_v60 = vpack.c.b16 %v498_v59, %v497_v58  ;;  %v435_v61 = vadd.f32 %v1293_v57, %v404_v56 }
 0x175   :  { %791 = vmatmul.bf16.gmra.mxu1 %v1312_v60  ;;  %v451_v1 = vmax.f32 %v435_v61, 0.0 }
 0x177   :  { %v467_v4 = vpack.c.bf16 %v451_v1, %v451_v1 }
 0x178   :  { %v320_v0 = vpop.f32.mrf.mxu1 }
 0x179   :  { %v406_v2 = vadd.f32 %v405_v62, %v320_v0  ;;  %v499_v18 = vunpack.c.l.b16 %v467_v4 }
 0x17b   :  { %v436_v3 = vadd.f32 %v1293_v57, %v406_v2 }
 0x17d   :  { %v452_v5 = vmax.f32 %v436_v3, 0.0  ;;  %v1082_v3 = vld [vmem:[#allocation4 + $0x70] sm:$0xff] }
 0x17f   :  { %v468_v6 = vpack.c.bf16 %v452_v5, %v452_v5 }
 0x180   :  { %v323_v14 = vpop.f32.mrf.mxu1 }
 0x181   :  { %v409_v17 = vadd.f32 %v408_v63, %v323_v14  ;;  %v500_v20 = vunpack.c.l.b16 %v468_v6 }
 0x183   :  { %v511_v21 = vpack.c.b16 %v500_v20, %v499_v18  ;;  %v437_v22 = vadd.f32 %v1293_v57, %v409_v17 }
 0x185   :  { %796 = vmatmul.bf16.gmra.mxu1 %v511_v21  ;;  %v453_v24 = vmax.f32 %v437_v22, 0.0 }
 0x187   :  { %v469_v28 = vpack.c.bf16 %v453_v24, %v453_v24 }
 0x188   :  { %v325_v23 = vpop.f32.mrf.mxu1 }
 0x189   :  { %v411_v25 = vadd.f32 %v410_v16, %v325_v23  ;;  %v501_v34 = vunpack.c.l.b16 %v469_v28 }
 0x18b   :  { %v438_v27 = vadd.f32 %v1293_v57, %v411_v25 }
 0x18d   :  { %v454_v29 = vmax.f32 %v438_v27, 0.0 }
 0x18f   :  { %v470_v31 = vpack.c.bf16 %v454_v29, %v454_v29 }
 0x190   :  { %v328_v32 = vpop.f32.mrf.mxu1 }
 0x191   :  { %v414_v33 = vadd.f32 %v413_v26, %v328_v32  ;;  %v502_v35 = vunpack.c.l.b16 %v470_v31 }
 0x193   :  { %v512_v36 = vpack.c.b16 %v502_v35, %v501_v34  ;;  %v439_v38 = vadd.f32 %v1293_v57, %v414_v33 }
 0x195   :  { %801 = vmatmul.bf16.gmra.mxu1 %v512_v36  ;;  %v455_v40 = vmax.f32 %v439_v38, 0.0 }
 0x197   :  { %v471_v43 = vpack.c.bf16 %v455_v40, %v455_v40 }
 0x198   :  { %v330_v39 = vpop.f32.mrf.mxu1 }
 0x199   :  { %v416_v41 = vadd.f32 %v415_v37, %v330_v39  ;;  %v503_v50 = vunpack.c.l.b16 %v471_v43 }
 0x19b   :  { %v440_v42 = vadd.f32 %v1293_v57, %v416_v41 }
 0x19d   :  { %v456_v44 = vmax.f32 %v440_v42, 0.0 }
 0x19f   :  { %v472_v47 = vpack.c.bf16 %v456_v44, %v456_v44 }
 0x1a0   :  { %v333_v48 = vpop.f32.mrf.mxu1 }
 0x1a1   :  { %v419_v49 = vadd.f32 %v418_v46, %v333_v48  ;;  %v504_v51 = vunpack.c.l.b16 %v472_v47 }
 0x1a3   :  { %v513_v52 = vpack.c.b16 %v504_v51, %v503_v50  ;;  %v441_v53 = vadd.f32 %v1293_v57, %v419_v49 }
 0x1a5   :  { %806 = vmatmul.bf16.gmra.mxu1 %v513_v52  ;;  %v457_v56 = vmax.f32 %v441_v53, 0.0 }
 0x1a7   :  { %v473_v61 = vpack.c.bf16 %v457_v56, %v457_v56 }
 0x1a8   :  { %v335_v55 = vpop.f32.mrf.mxu1 }
 0x1a9   :  { %v421_v58 = vadd.f32 %v420_v54, %v335_v55  ;;  %v505_v0 = vunpack.c.l.b16 %v473_v61 }
 0x1ab   :  { %v442_v59 = vadd.f32 %v1293_v57, %v421_v58  ;;  %v1083_v57 = vld [vmem:[#allocation4 + $0x78] sm:$0xff] }
 0x1ac   :  { %817 = vmatpush.bf16.msrb.mxu2 %v1083_v57 }
 0x1ad   :  { %v458_v62 = vmax.f32 %v442_v59, 0.0 }
 0x1af   :  { %v474_v63 = vpack.c.bf16 %v458_v62, %v458_v62 }
 0x1b0   :  { %818 = vmatpush.bf16.msrb.mxu2 %v1082_v3 }
 0x1b1   :  { %v506_v1 = vunpack.c.l.b16 %v474_v63 }
 0x1b3   :  { %v514_v2 = vpack.c.b16 %v506_v1, %v505_v0 }
 0x1b5   :  { %523 = vmatpush.bf16.msrb.mxu3 %v514_v2  ;;  %811 = vmatmul.bf16.gmra.mxu1 %v514_v2 }
 0x1b9   :  { %524 = vmatpush.bf16.msrb.mxu3 %v513_v52 }
 0x1bd   :  { %525 = vmatpush.bf16.msrb.mxu3 %v512_v36 }
 0x1c1   :  { %526 = vmatpush.bf16.msrb.mxu3 %v511_v21 }
 0x1c2   :  { %v777_v59 = vpop.f32.mrf.mxu1 }
 0x1c5   :  { %527 = vmatpush.bf16.msrb.mxu3 %v1312_v60  ;;  %v1081_v60 = vld [vmem:[#allocation4 + $0x68] sm:$0xff] }
 0x1c6   :  { %819 = vmatpush.bf16.msrb.mxu2 %v1081_v60 }
 0x1c9   :  { %528 = vmatpush.bf16.msrb.mxu3 %v1307_v45 }
 0x1ca   :  { %v779_v1 = vpop.f32.mrf.mxu1 }
 0x1cd   :  { %529 = vmatpush.bf16.msrb.mxu3 %v1302_v30  ;;  %v1080_v30 = vld [vmem:[#allocation4 + $0x60] sm:$0xff] }
 0x1ce   :  { %820 = vmatpush.bf16.msrb.mxu2 %v1080_v30  ;;  %v1338_v30 = vld [vmem:[%s1410_s6] ss:$0 sm:$0xff] }
 0x1d1   :  { %530 = vmatpush.bf16.msrb.mxu3 %v1297_v7  ;;  %v1079_v7 = vld [vmem:[#allocation4 + $0x58] sm:$0xff] }
 0x1d2   :  { %821 = vmatpush.bf16.msrb.mxu2 %v1079_v7  ;;  %v782_v60 = vpop.f32.mrf.mxu1 }
 0x1d4   :  { %531 = vmatmul.bf16.vlgmr.msrb.gmra.mxu3 %v1223_v8  ;;  %v1078_v8 = vld [vmem:[#allocation4 + $0x50] sm:$0xff] }
 0x1d6   :  { %822 = vmatpush.bf16.msrb.mxu2 %v1078_v8  ;;  %v778_v8 = vadd.f32 %v1338_v30, %v777_v59 }
 0x1da   :  { %v784_v7 = vpop.f32.mrf.mxu1 }
 0x1e4   :  { %536 = vmatmul.bf16.gmra.mxu3 %v1229_v9  ;;  %v1077_v9 = vld [vmem:[#allocation4 + $0x48] sm:$0xff] }
 0x1e5   :  { %823 = vmatpush.bf16.msrb.mxu2 %v1077_v9 }
 0x1f4   :  { %541 = vmatmul.bf16.gmra.mxu3 %v1235_v10  ;;  %v1076_v10 = vld [vmem:[#allocation4 + $0x40] sm:$0xff] }
 0x1f5   :  { %824 = vmatpush.bf16.msrb.mxu2 %v1076_v10 }
 0x204   :  { %546 = vmatmul.bf16.gmra.mxu3 %v1241_v11 }
 0x214   :  { %551 = vmatmul.bf16.gmra.mxu3 %v1247_v12 }
 0x224   :  { %556 = vmatmul.bf16.gmra.mxu3 %v1253_v13 }
 0x234   :  { %561 = vmatmul.bf16.gmra.mxu3 %v1262_v15 }
 0x244   :  { %566 = vmatmul.bf16.gmra.mxu3 %v1273_v19 }
 0x257   :  { %v532_v11 = vpop.f32.mrf.mxu3 }
 0x258   :  { %v572_v12 = vpack.c.bf16 %v532_v11, %v532_v11  ;;  %v787_v11 = vpop.f32.mrf.mxu1 }
 0x25a   :  { %v604_v5 = vunpack.c.l.b16 %v572_v12  ;;  %v780_v12 = vadd.f32 %v1338_v30, %v779_v1 }
 0x25f   :  { %v534_v45 = vpop.f32.mrf.mxu3 }
 0x260   :  { %v573_v4 = vpack.c.bf16 %v534_v45, %v534_v45 }
 0x262   :  { %v605_v13 = vunpack.c.l.b16 %v573_v4 }
 0x264   :  { %v620_v6 = vpack.c.b16 %v605_v13, %v604_v5  ;;  %v783_v5 = vadd.f32 %v1338_v30, %v782_v60  ;;  %v789_v13 = vpop.f32.mrf.mxu1 }
 0x266   :  { %825 = vmatmul.bf16.vlgmr.msrb.gmra.mxu2 %v620_v6 }
 0x267   :  { %v537_v14 = vpop.f32.mrf.mxu3 }
 0x268   :  { %v574_v16 = vpack.c.bf16 %v537_v14, %v537_v14 }
 0x26a   :  { %v606_v18 = vunpack.c.l.b16 %v574_v16  ;;  %v785_v16 = vadd.f32 %v1338_v30, %v784_v7 }
 0x26f   :  { %v539_v17 = vpop.f32.mrf.mxu3 }
 0x270   :  { %v575_v15 = vpack.c.bf16 %v539_v17, %v539_v17 }
 0x272   :  { %v607_v20 = vunpack.c.l.b16 %v575_v15 }
 0x274   :  { %v621_v21 = vpack.c.b16 %v607_v20, %v606_v18  ;;  %v792_v18 = vpop.f32.mrf.mxu1  ;;  %v788_v20 = vadd.f32 %v1338_v30, %v787_v11 }
 0x276   :  { %830 = vmatmul.bf16.gmra.mxu2 %v621_v21 }
 0x277   :  { %v542_v22 = vpop.f32.mrf.mxu3 }
 0x278   :  { %v576_v23 = vpack.c.bf16 %v542_v22, %v542_v22 }
 0x27a   :  { %v608_v25 = vunpack.c.l.b16 %v576_v23 }
 0x27c   :  { %v794_v23 = vpop.f32.mrf.mxu1 }
 0x27f   :  { %v544_v24 = vpop.f32.mrf.mxu3 }
 0x280   :  { %v577_v19 = vpack.c.bf16 %v544_v24, %v544_v24  ;;  %v790_v24 = vadd.f32 %v1338_v30, %v789_v13 }
 0x282   :  { %v609_v26 = vunpack.c.l.b16 %v577_v19 }
 0x284   :  { %v622_v27 = vpack.c.b16 %v609_v26, %v608_v25  ;;  %v797_v26 = vpop.f32.mrf.mxu1 }
 0x286   :  { %835 = vmatmul.bf16.gmra.mxu2 %v622_v27  ;;  %v793_v27 = vadd.f32 %v1338_v30, %v792_v18 }
 0x287   :  { %v547_v28 = vpop.f32.mrf.mxu3 }
 0x288   :  { %v578_v29 = vpack.c.bf16 %v547_v28, %v547_v28 }
 0x28a   :  { %v610_v33 = vunpack.c.l.b16 %v578_v29 }
 0x28f   :  { %v549_v31 = vpop.f32.mrf.mxu3 }
 0x290   :  { %v579_v32 = vpack.c.bf16 %v549_v31, %v549_v31  ;;  %v795_v31 = vadd.f32 %v1338_v30, %v794_v23 }
 0x292   :  { %v611_v34 = vunpack.c.l.b16 %v579_v32  ;;  %v799_v32 = vpop.f32.mrf.mxu1 }
 0x294   :  { %v623_v35 = vpack.c.b16 %v611_v34, %v610_v33 }
 0x296   :  { %840 = vmatmul.bf16.gmra.mxu2 %v623_v35  ;;  %v798_v35 = vadd.f32 %v1338_v30, %v797_v26 }
 0x297   :  { %v552_v36 = vpop.f32.mrf.mxu3 }
 0x298   :  { %v580_v37 = vpack.c.bf16 %v552_v36, %v552_v36 }
 0x29a   :  { %v612_v40 = vunpack.c.l.b16 %v580_v37 }
 0x29f   :  { %v554_v38 = vpop.f32.mrf.mxu3 }
 0x2a0   :  { %v581_v39 = vpack.c.bf16 %v554_v38, %v554_v38  ;;  %v802_v38 = vpop.f32.mrf.mxu1 }
 0x2a2   :  { %v613_v41 = vunpack.c.l.b16 %v581_v39  ;;  %v800_v39 = vadd.f32 %v1338_v30, %v799_v32 }
 0x2a4   :  { %v624_v42 = vpack.c.b16 %v613_v41, %v612_v40 }
 0x2a6   :  { %845 = vmatmul.bf16.gmra.mxu2 %v624_v42 }
 0x2a7   :  { %v557_v43 = vpop.f32.mrf.mxu3 }
 0x2a8   :  { %v582_v44 = vpack.c.bf16 %v557_v43, %v557_v43  ;;  %v804_v42 = vpop.f32.mrf.mxu1  ;;  %v803_v43 = vadd.f32 %v1338_v30, %v802_v38 }
 0x2aa   :  { %v614_v48 = vunpack.c.l.b16 %v582_v44 }
 0x2af   :  { %v559_v46 = vpop.f32.mrf.mxu3 }
 0x2b0   :  { %v583_v47 = vpack.c.bf16 %v559_v46, %v559_v46 }
 0x2b2   :  { %v615_v49 = vunpack.c.l.b16 %v583_v47  ;;  %v807_v47 = vpop.f32.mrf.mxu1 }
 0x2b4   :  { %v625_v50 = vpack.c.b16 %v615_v49, %v614_v48  ;;  %v805_v48 = vadd.f32 %v1338_v30, %v804_v42 }
 0x2b6   :  { %850 = vmatmul.bf16.gmra.mxu2 %v625_v50 }
 0x2b7   :  { %v562_v51 = vpop.f32.mrf.mxu3 }
 0x2b8   :  { %v584_v52 = vpack.c.bf16 %v562_v51, %v562_v51  ;;  %v808_v51 = vadd.f32 %v1338_v30, %v807_v47 }
 0x2ba   :  { %v616_v55 = vunpack.c.l.b16 %v584_v52  ;;  %v809_v52 = vpop.f32.mrf.mxu1 }
 0x2bf   :  { %v564_v53 = vpop.f32.mrf.mxu3 }
 0x2c0   :  { %v585_v54 = vpack.c.bf16 %v564_v53, %v564_v53 }
 0x2c2   :  { %v617_v56 = vunpack.c.l.b16 %v585_v54  ;;  %v812_v59 = vpop.f32.mrf.mxu1 }
 0x2c4   :  { %v626_v58 = vpack.c.b16 %v617_v56, %v616_v55  ;;  %v810_v55 = vadd.f32 %v1338_v30, %v809_v52 }
 0x2c6   :  { %855 = vmatmul.bf16.gmra.mxu2 %v626_v58 }
 0x2c7   :  { %v567_v61 = vpop.f32.mrf.mxu3 }
 0x2c8   :  { %v586_v62 = vpack.c.bf16 %v567_v61, %v567_v61  ;;  %v813_v61 = vadd.f32 %v1338_v30, %v812_v59 }
 0x2ca   :  { %v618_v2 = vunpack.c.l.b16 %v586_v62 }
 0x2cf   :  { %v569_v63 = vpop.f32.mrf.mxu3 }
 0x2d0   :  { %v587_v0 = vpack.c.bf16 %v569_v63, %v569_v63 }
 0x2d2   :  { %v619_v57 = vunpack.c.l.b16 %v587_v0  ;;  %v814_v0 = vpop.f32.mrf.mxu1 }
 0x2d3   :  { %v815_v1 = vadd.f32 %v1338_v30, %v814_v0 }
 0x2d4   :  { %v627_v3 = vpack.c.b16 %v619_v57, %v618_v2 }
 0x2d6   :  { %860 = vmatmul.bf16.gmra.mxu2 %v627_v3 }
 0x2e9   :  { %v826_v9 = vpop.f32.mrf.mxu2 }
 0x2ea   :  { %v827_v10 = vadd.f32 %v826_v9, %v778_v8 }
 0x2ec   :  { %866 = vst [vmem:[%s1411_s7] sm:$0xff] %v827_v10 }
 0x2f1   :  { %v828_v45 = vpop.f32.mrf.mxu2 }
 0x2f2   :  { %v829_v4 = vadd.f32 %v828_v45, %v780_v12 }
 0x2f4   :  { %867 = vst [vmem:[%s1411_s7 + $0x8] sm:$0xff] %v829_v4 }
 0x2f9   :  { %v831_v6 = vpop.f32.mrf.mxu2 }
 0x2fa   :  { %v832_v14 = vadd.f32 %v831_v6, %v783_v5 }
 0x2fc   :  { %868 = vst [vmem:[%s1411_s7 + $0x10] sm:$0xff] %v832_v14 }
 0x301   :  { %v833_v17 = vpop.f32.mrf.mxu2 }
 0x302   :  { %v834_v15 = vadd.f32 %v833_v17, %v785_v16 }
 0x304   :  { %869 = vst [vmem:[%s1411_s7 + $0x18] sm:$0xff] %v834_v15 }
 0x309   :  { %v836_v21 = vpop.f32.mrf.mxu2 }
 0x30a   :  { %v837_v22 = vadd.f32 %v836_v21, %v788_v20 }
 0x30c   :  { %870 = vst [vmem:[%s1411_s7 + $0x20] sm:$0xff] %v837_v22 }
 0x311   :  { %v838_v19 = vpop.f32.mrf.mxu2 }
 0x312   :  { %v839_v25 = vadd.f32 %v838_v19, %v790_v24 }
 0x314   :  { %871 = vst [vmem:[%s1411_s7 + $0x28] sm:$0xff] %v839_v25 }
 0x319   :  { %v841_v28 = vpop.f32.mrf.mxu2 }
 0x31a   :  { %v842_v29 = vadd.f32 %v841_v28, %v793_v27 }
 0x31c   :  { %872 = vst [vmem:[%s1411_s7 + $0x30] sm:$0xff] %v842_v29 }
 0x321   :  { %v843_v33 = vpop.f32.mrf.mxu2 }
 0x322   :  { %v844_v34 = vadd.f32 %v843_v33, %v795_v31 }
 0x324   :  { %873 = vst [vmem:[%s1411_s7 + $0x38] sm:$0xff] %v844_v34 }
 0x329   :  { %v846_v36 = vpop.f32.mrf.mxu2 }
 0x32a   :  { %v847_v37 = vadd.f32 %v846_v36, %v798_v35 }
 0x32c   :  { %874 = vst [vmem:[%s1411_s7 + $0x40] sm:$0xff] %v847_v37 }
 0x331   :  { %v848_v40 = vpop.f32.mrf.mxu2 }
 0x332   :  { %v849_v41 = vadd.f32 %v848_v40, %v800_v39 }
 0x334   :  { %875 = vst [vmem:[%s1411_s7 + $0x48] sm:$0xff] %v849_v41 }
 0x339   :  { %v851_v44 = vpop.f32.mrf.mxu2 }
 0x33a   :  { %v852_v46 = vadd.f32 %v851_v44, %v803_v43 }
 0x33c   :  { %876 = vst [vmem:[%s1411_s7 + $0x50] sm:$0xff] %v852_v46 }
 0x341   :  { %v853_v49 = vpop.f32.mrf.mxu2 }
 0x342   :  { %v854_v50 = vadd.f32 %v853_v49, %v805_v48 }
 0x344   :  { %877 = vst [vmem:[%s1411_s7 + $0x58] sm:$0xff] %v854_v50 }
 0x349   :  { %v856_v53 = vpop.f32.mrf.mxu2 }
 0x34a   :  { %v857_v54 = vadd.f32 %v856_v53, %v808_v51 }
 0x34c   :  { %878 = vst [vmem:[%s1411_s7 + $0x60] sm:$0xff] %v857_v54 }
 0x351   :  { %v858_v56 = vpop.f32.mrf.mxu2 }
 0x352   :  { %v859_v58 = vadd.f32 %v858_v56, %v810_v55 }
 0x354   :  { %879 = vst [vmem:[%s1411_s7 + $0x68] sm:$0xff] %v859_v58 }
 0x359   :  { %v861_v62 = vpop.f32.mrf.mxu2 }
 0x35a   :  { %v862_v63 = vadd.f32 %v861_v62, %v813_v61 }
 0x35c   :  { %880 = vst [vmem:[%s1411_s7 + $0x70] sm:$0xff] %v862_v63 }
 0x361   :  { %v863_v2 = vpop.f32.mrf.mxu2 }
 0x362   :  { %v864_v57 = vadd.f32 %v863_v2, %v815_v1 }
 0x364   :  { %881 = vst [vmem:[%s1411_s7 + $0x78] sm:$0xff] %v864_v57 }
 0x365   :  { %886 = vsyncpa [#allocation3], 1 }
 0x366   :  { %887 = vsyncpa [#allocation5], 1 }

</bundles_post_ra>
